<compile_context>
chip_gen: v5e
topology: v5e:2x2
jax: 0.10.0
libtpu: 0.0.40
codegen_flags: <defaults>
</compile_context>

<pallas_src>
import functools

import jax
import jax.numpy as jnp
from jax import lax
from jax.experimental import pallas as pl
from jax.experimental.pallas import tpu as pltpu

_NEG_INF = -1e30
# 32 MiB is valid on every generation (v5e default is only 16 MiB); raise
# toward 64-100 MiB for realistic H/V (respect v7x's 64 MiB physical VMEM).
_VMEM_LIMIT = 32 * 1024 * 1024


def _round_up(x, m):
    return (x + m - 1) // m * m


# --------------------------------------------------------------------------
# Kernel 1: step-invariant encoder projection (run once per sequence).
# --------------------------------------------------------------------------
def _encoder_proj_kernel(enc_ref, w_eo_ref, b_col_ref, eo_t_ref):
    # eo_t[h, j] = sum_i W_eo[h, i] * enc[j, i] + (b_eo + b_hs)[h]
    # A @ B^T via transposed-contraction dot_general: the transposed layout is
    # produced in-kernel, no extra HBM read/write pass for an XLA transpose.
    eo = lax.dot_general(
        w_eo_ref[...], enc_ref[...],
        dimension_numbers=(((1,), (1,)), ((), ())),
        preferred_element_type=jnp.float32)
    eo_t_ref[...] = (eo + b_col_ref[...]).astype(eo_t_ref.dtype)


def precompute_encoder_projection(encoder_outputs, params):
    """encoder_outputs: [B, T, H].  Returns (enc_flat [B*T, H], eo_t [H, B*T]).

    Step-invariant part of the forward: for autoregressive decoding call this
    once per sequence and reuse the result for every decode step."""
    B, T, H = encoder_outputs.shape
    BT = B * T
    wdt = params["emb"].dtype
    enc_flat = encoder_outputs.reshape(BT, H).astype(wdt)

    tile = BT
    for cand in (512, 256, 128):              # pipelined / megacore-shardable
        if BT % cand == 0:
            tile = cand
            break
    grid = (BT // tile,)

    eo_t = pl.pallas_call(
        _encoder_proj_kernel,
        out_shape=jax.ShapeDtypeStruct((H, BT), wdt),
        grid=grid,
        in_specs=[
            pl.BlockSpec((tile, H), lambda j: (j, 0)),
            pl.BlockSpec((H, H), lambda j: (0, 0)),
            pl.BlockSpec((H, 1), lambda j: (0, 0)),
        ],
        out_specs=pl.BlockSpec((H, tile), lambda j: (0, j)),
        compiler_params=pltpu.CompilerParams(
            dimension_semantics=("parallel",),
            vmem_limit_bytes=_VMEM_LIMIT),
        cost_estimate=pl.CostEstimate(
            flops=int(2 * H * H * BT),
            transcendentals=0,
            bytes_accessed=int((2 * BT * H + H * H + H)
                               * enc_flat.dtype.itemsize)),
    )(enc_flat, params["w_eo"], params["b_attn_col"])
    return enc_flat, eo_t


# --------------------------------------------------------------------------
# Kernel 2: N decode steps inside one pallas_call (grid over steps).
# --------------------------------------------------------------------------
def _decoder_step_kernel(
    ids_ref,       # [1, B, 1] int32 token ids for this step
    h0_ref,        # [B, H]    initial hidden state (used only at step 0)
    eo_t_ref,      # [H, B*T]  W_eo enc + b_eo + b_hs (precomputed, transposed)
    enc_ref,       # [B*T, H]  flattened encoder outputs
    emb_ref,       # [V, H]    embedding table
    w_hs_ref,      # [H, H]    hidden_state_w weight (torch layout)
    w_hh_ref,      # [H, 3H]   GRU weight_hh^T  (gate order r|z|n along lanes)
    w_ih_ref,      # [H, 3H]   GRU weight_ih^T
    w_comb_e_ref,  # [H, H]    attn_combine weight^T, embedding half
    w_comb_c_ref,  # [H, H]    attn_combine weight^T, context half
    w_out_ref,     # [H, Vp]   out weight^T, zero-padded to a 128-lane multiple
    bias_ref,      # [8, LW]   rows: b_hh | b_ih | b_comb | b_out(pad=-1e30) | v | 0
    logits_ref,    # [1, B, Vp]
    hidden_ref,    # [B, H]    final hidden; doubles as the cross-step carry
    attn_ref,      # [1, B, T]
    *, training,
):
    f32 = jnp.float32
    step = pl.program_id(0)
    B, H = h0_ref.shape
    BT = enc_ref.shape[0]
    T = BT // B
    V = emb_ref.shape[0]
    Vp = w_out_ref.shape[1]
    wdt = emb_ref.dtype

    # hidden_ref has a constant output block index -> it stays VMEM-resident
    # across the whole step grid and serves as the recurrent carry.
    @pl.when(step == 0)
    def _init():
        hidden_ref[...] = h0_ref[...]

    h = hidden_ref[...]                                   # [B, H] f32

    # --- packed small constants (static slices of one VMEM slab) ---
    b_hh = bias_ref[0:1, 0:3 * H]
    b_ih = bias_ref[1:2, 0:3 * H]
    b_comb = bias_ref[2:3, 0:H]
    b_out = bias_ref[3:4, 0:Vp]
    v_row = bias_ref[4:5, 0:H]

    # --- embedding lookup as one one-hot MXU matmul (OOB ids -> zero embedding) ---
    ids_col = ids_ref[0]                                  # [B, 1] int32
    onehot = jnp.where(
        lax.broadcasted_iota(jnp.int32, (B, V), 1) == ids_col, 1.0, 0.0
    ).astype(wdt)                                         # [B, V]
    emb = jnp.dot(onehot, emb_ref[...], preferred_element_type=f32)   # [B, H]

    # --- attention, fully batched (no per-batch Python loops) ---
    # hs in column layout [H, B] via a transposed-contraction dot (q@k^T form):
    # removes the separate h^T input / host transpose of the previous version.
    hs_col = lax.dot_general(
        w_hs_ref[...], h.astype(wdt),
        dimension_numbers=(((1,), (1,)), ((), ())),
        preferred_element_type=f32)                       # [H, B]

    col = lax.broadcasted_iota(jnp.int32, (B, BT), 1)
    row = lax.broadcasted_iota(jnp.int32, (B, BT), 0)
    block_mask = (col >= row * T) & (col < row * T + T)   # True iff col // T == row
    expand = jnp.where(block_mask, 1.0, 0.0)              # [B, BT] f32

    hs_exp = jnp.dot(hs_col, expand, preferred_element_type=f32)      # [H, BT]
    a_t = jnp.tanh(eo_t_ref[...].astype(f32) + hs_exp)                # [H, BT]
    scores = jnp.dot(v_row, a_t, preferred_element_type=f32)          # [1, BT]

    # ONE block-diagonal masked softmax along lanes for all batch rows.
    s_bd = jnp.where(block_mask, scores, _NEG_INF)                    # [B, BT]
    m = jnp.max(s_bd, axis=1, keepdims=True)
    e = jnp.exp(s_bd - m)                                             # masked -> 0
    attn_bd = e * pl.reciprocal(jnp.sum(e, axis=1, keepdims=True), approx=True)

    ctx = jnp.dot(attn_bd.astype(wdt), enc_ref[...],
                  preferred_element_type=f32)                         # [B, H]

    # [B, T] attention weights: pick the diagonal blocks with one more MXU dot.
    eye_t = jnp.where(
        lax.broadcasted_iota(jnp.int32, (T, T), 0)
        == lax.broadcasted_iota(jnp.int32, (T, T), 1), 1.0, 0.0)      # [T, T]
    sel = jnp.concatenate([eye_t] * B, axis=0)                        # [BT, T]
    attn2d = jnp.dot(attn_bd, sel, preferred_element_type=f32)        # [B, T]

    # --- attn_combine(cat(emb, ctx)) + relu : two MXU dots, no lane concat ---
    x = jnp.maximum(
        jnp.dot(emb.astype(wdt), w_comb_e_ref[...], preferred_element_type=f32)
        + jnp.dot(ctx.astype(wdt), w_comb_c_ref[...], preferred_element_type=f32)
        + b_comb, 0.0)                                                # [B, H]

    # --- GRU cell, one step (torch gate order r, z, n) ---
    gi = jnp.dot(x.astype(wdt), w_ih_ref[...], preferred_element_type=f32) + b_ih
    gh = jnp.dot(h.astype(wdt), w_hh_ref[...], preferred_element_type=f32) + b_hh
    r = jax.nn.sigmoid(gi[:, 0:H] + gh[:, 0:H])
    z = jax.nn.sigmoid(gi[:, H:2 * H] + gh[:, H:2 * H])
    n = jnp.tanh(gi[:, 2 * H:3 * H] + r * gh[:, 2 * H:3 * H])
    h_new = (1.0 - z) * n + z * h                                     # [B, H]

    # --- output projection; padded lanes carry a -1e30 bias so they vanish
    #     from the training-mode log_softmax and get sliced off outside. ---
    logits = jnp.dot(h_new.astype(wdt), w_out_ref[...],
                     preferred_element_type=f32) + b_out              # [B, Vp]
    if training:
        lmax = jnp.max(logits, axis=1, keepdims=True)
        sh = logits - lmax
        logits = sh - jnp.log(jnp.sum(jnp.exp(sh), axis=1, keepdims=True))

    logits_ref[0] = logits
    attn_ref[0] = attn2d
    hidden_ref[...] = h_new


def _decode_cost_estimate(N, B, T, H, V, Vp, wbytes):
    BT = B * T
    mm = (B * V * H + H * H * B + H * B * BT + H * BT + B * BT * H
          + B * BT * T + 2 * B * H * H + 2 * B * H * 3 * H + B * H * Vp)
    flops = 2 * N * mm
    trans = N * (H * BT + B * BT + 3 * B * H + 2 * B * Vp)
    weight_bytes = (V * H + H * H + 2 * H * 3 * H + 2 * H * H + H * Vp) * wbytes
    act_bytes = 2 * BT * H * wbytes + B * H * 4
    io_bytes = N * B * (Vp + T + 1) * 4 + B * H * 4
    return pl.CostEstimate(flops=int(flops), transcendentals=int(trans),
                           bytes_accessed=int(weight_bytes + act_bytes + io_bytes))


def decoder_attention_decode(step_ids, hidden, enc_flat, eo_t, params, *, training=True):
    """Run N teacher-forced decode steps inside ONE pallas_call.

    step_ids: [N, B] int token ids (one row per step), hidden: [1, B, H],
    enc_flat / eo_t: outputs of precompute_encoder_projection.
    Weights / enc_flat / eo_t use constant block indices over the step grid,
    so they are DMA'd once and stay VMEM-resident for every step."""
    N, B = step_ids.shape
    H = hidden.shape[2]
    BT = enc_flat.shape[0]
    T = BT // B
    V = params["emb"].shape[0]
    Vp = params["w_out"].shape[1]
    wdt = params["emb"].dtype

    h0 = hidden.reshape(B, H).astype(jnp.float32)
    ids = step_ids.astype(jnp.int32).reshape(N, B, 1)

    def const_spec(shape):
        nd = len(shape)
        return pl.BlockSpec(shape, lambda s: (0,) * nd)

    in_specs = [
        pl.BlockSpec((1, B, 1), lambda s: (s, 0, 0)),    # ids, per step
        const_spec((B, H)),                              # h0
        const_spec((H, BT)),                             # eo_t (resident)
        const_spec((BT, H)),                             # enc_flat (resident)
        const_spec(params["emb"].shape),
        const_spec(params["w_hs"].shape),
        const_spec(params["w_hh"].shape),
        const_spec(params["w_ih"].shape),
        const_spec(params["w_comb_e"].shape),
        const_spec(params["w_comb_c"].shape),
        const_spec(params["w_out"].shape),
        const_spec(params["bias"].shape),
    ]
    out_shape = (
        jax.ShapeDtypeStruct((N, B, Vp), jnp.float32),   # logits (128-lane padded)
        jax.ShapeDtypeStruct((B, H), jnp.float32),       # final hidden
        jax.ShapeDtypeStruct((N, B, T), jnp.float32),    # attention weights
    )
    out_specs = (
        pl.BlockSpec((1, B, Vp), lambda s: (s, 0, 0)),
        pl.BlockSpec((B, H), lambda s: (0, 0)),
        pl.BlockSpec((1, B, T), lambda s: (s, 0, 0)),
    )

    logits, h_last, attn = pl.pallas_call(
        functools.partial(_decoder_step_kernel, training=training),
        grid=(N,),
        out_shape=out_shape,
        in_specs=in_specs,
        out_specs=out_specs,
        compiler_params=pltpu.CompilerParams(
            dimension_semantics=("arbitrary",),          # hidden carried across steps
            vmem_limit_bytes=_VMEM_LIMIT),
        cost_estimate=_decode_cost_estimate(N, B, T, H, V, Vp,
                                            params["emb"].dtype.itemsize),
    )(ids, h0, eo_t, enc_flat.astype(wdt),
      params["emb"], params["w_hs"], params["w_hh"], params["w_ih"],
      params["w_comb_e"], params["w_comb_c"], params["w_out"], params["bias"])

    return logits[:, :, :V], h_last[None], attn


def decoder_attention_2d(input_ids, hidden, encoder_outputs, params, *, training=True):
    """Full equivalent of DecoderAttention2d.forward (GRU branch).
    Returns (output [B, V], hidden [1, B, H], attn_weights [B, T])."""
    enc_flat, eo_t = precompute_encoder_projection(encoder_outputs, params)
    logits, h_new, attn = decoder_attention_decode(
        input_ids.reshape(1, -1), hidden, enc_flat, eo_t, params, training=training)
    return logits[0], h_new, attn[0]


# --------------------------------------------------------------------------
# Parameter packing from torch-layout weights.
# --------------------------------------------------------------------------
def pack_params(tp, hidden_size, vocab_size, weight_dtype=jnp.float32):
    """Repack torch-layout weights for the kernels.

    weight_dtype: storage dtype for the large matrices / embedding / encoder
    activations (jnp.bfloat16 halves weight DMA bytes; MXU still accumulates
    in f32 and all elementwise math stays f32)."""
    H, V = hidden_size, vocab_size
    Vp = _round_up(V, 128)
    LW = _round_up(max(3 * H, Vp, H), 128)
    f32 = jnp.float32
    tp = {k: jnp.asarray(v, f32) for k, v in tp.items()}

    def pad_row(x, fill=0.0):
        x = x.reshape(1, -1)
        return jnp.pad(x, ((0, 0), (0, LW - x.shape[1])), constant_values=fill)

    bias = jnp.concatenate([
        pad_row(tp["gru_b_hh"]),               # row 0: b_hr | b_hz | b_hn   [3H]
        pad_row(tp["gru_b_ih"]),               # row 1: b_ir | b_iz | b_in   [3H]
        pad_row(tp["attn_combine_b"]),         # row 2                        [H]
        pad_row(tp["out_b"], fill=_NEG_INF),   # row 3: out bias, pad=-1e30   [V]
        pad_row(tp["v"]),                      # row 4: attention vector v    [H]
        jnp.zeros((3, LW), f32),               # rows 5-7: sublane padding
    ], axis=0)

    w_out = jnp.pad(tp["out_w"].T, ((0, 0), (0, Vp - V)))           # [H, Vp]

    return dict(
        emb=tp["embedding_w"].astype(weight_dtype),                  # [V, H]
        w_eo=tp["encoder_outputs_w_w"].astype(weight_dtype),         # [H, H] torch
        b_attn_col=(tp["encoder_outputs_w_b"]
                    + tp["hidden_state_w_b"]).reshape(H, 1),         # [H, 1] f32
        w_hs=tp["hidden_state_w_w"].astype(weight_dtype),            # [H, H] torch
        w_hh=tp["gru_w_hh"].T.astype(weight_dtype),                  # [H, 3H]
        w_ih=tp["gru_w_ih"].T.astype(weight_dtype),                  # [H, 3H]
        w_comb_e=tp["attn_combine_w"][:, :H].T.astype(weight_dtype), # [H, H]
        w_comb_c=tp["attn_combine_w"][:, H:].T.astype(weight_dtype), # [H, H]
        w_out=w_out.astype(weight_dtype),                            # [H, Vp]
        bias=bias,                                                   # [8, LW] f32
    )


# --------------------------------------------------------------------------
# Pure-JAX reference (mirrors the torch forward) for a correctness check.
# --------------------------------------------------------------------------
def _reference_forward(input_ids, hidden, enc, p, training):
    with jax.default_matmul_precision("highest"):
        B, T, H = enc.shape
        h = hidden[0]
        emb = p["embedding_w"][input_ids]
        eo = enc @ p["encoder_outputs_w_w"].T + p["encoder_outputs_w_b"]
        hs = h @ p["hidden_state_w_w"].T + p["hidden_state_w_b"]
        s = jnp.tanh(eo + hs[:, None, :])
        s = (s.reshape(-1, H) @ p["v"]).reshape(B, T)
        attn = jax.nn.softmax(s, axis=1)
        ctx = jnp.einsum("bt,bth->bh", attn, enc)
        x = jnp.concatenate([emb, ctx], axis=1) @ p["attn_combine_w"].T + p["attn_combine_b"]
        x = jnp.maximum(x, 0.0)
        gi = x @ p["gru_w_ih"].T + p["gru_b_ih"]
        gh = h @ p["gru_w_hh"].T + p["gru_b_hh"]
        r = jax.nn.sigmoid(gi[:, :H] + gh[:, :H])
        z = jax.nn.sigmoid(gi[:, H:2 * H] + gh[:, H:2 * H])
        n = jnp.tanh(gi[:, 2 * H:] + r * gh[:, 2 * H:])
        h_new = (1.0 - z) * n + z * h
        logits = h_new @ p["out_w"].T + p["out_b"]
        if training:
            logits = jax.nn.log_softmax(logits, axis=1)
        return logits, h_new[None], attn


if __name__ == "__main__":
    key = jax.random.PRNGKey(0)
    B, H, V = 2, 32, 24
    feat = (4, 4)                       # decoder_input_feature_size
    T = feat[0] * feat[1]               # flatten_feature_size

    keys = jax.random.split(key, 20)

    def nrm(k, shape, scale=0.1):
        return (scale * jax.random.normal(k, shape)).astype(jnp.float32)

    torch_params = dict(
        embedding_w=nrm(keys[0], (V, H), 1.0),
        encoder_outputs_w_w=nrm(keys[1], (H, H)), encoder_outputs_w_b=nrm(keys[2], (H,)),
        hidden_state_w_w=nrm(keys[3], (H, H)), hidden_state_w_b=nrm(keys[4], (H,)),
        v=nrm(keys[5], (H, 1)),
        attn_combine_w=nrm(keys[6], (H, 2 * H)), attn_combine_b=nrm(keys[7], (H,)),
        gru_w_ih=nrm(keys[8], (3 * H, H)), gru_b_ih=nrm(keys[9], (3 * H,)),
        gru_w_hh=nrm(keys[10], (3 * H, H)), gru_b_hh=nrm(keys[11], (3 * H,)),
        out_w=nrm(keys[12], (V, H)), out_b=nrm(keys[13], (V,)),
    )
    params = pack_params(torch_params, H, V)

    input_ids = jax.random.randint(keys[14], (B,), 0, V)
    hidden = nrm(keys[15], (1, B, H), 1.0)
    encoder_outputs = nrm(keys[16], (B, T, H), 0.5)

    # --- single decode step (== module forward), f32 weights ---
    out, h_new, attn = decoder_attention_2d(input_ids, hidden, encoder_outputs,
                                            params, training=True)
    jax.block_until_ready((out, h_new, attn))
    ref_out, ref_h, ref_attn = _reference_forward(input_ids, hidden, encoder_outputs,
                                                  torch_params, True)
    assert out.shape == (B, V)
    assert h_new.shape == (1, B, H)
    assert attn.shape == (B, T)
    assert jnp.allclose(out, ref_out, atol=5e-3, rtol=5e-3)
    assert jnp.allclose(h_new, ref_h, atol=5e-3, rtol=5e-3)
    assert jnp.allclose(attn, ref_attn, atol=5e-3, rtol=5e-3)

    # --- fused multi-step decode (weights stay VMEM-resident across steps) ---
    N = 3
    step_ids = jax.random.randint(keys[17], (N, B), 0, V)
    enc_flat, eo_t = precompute_encoder_projection(encoder_outputs, params)
    logits_seq, h_last, attn_seq = decoder_attention_decode(
        step_ids, hidden, enc_flat, eo_t, params, training=True)
    jax.block_until_ready((logits_seq, h_last, attn_seq))
    h_ref = hidden
    for si in range(N):
        lo, h_ref, at = _reference_forward(step_ids[si], h_ref, encoder_outputs,
                                           torch_params, True)
        assert jnp.allclose(logits_seq[si], lo, atol=1e-2, rtol=1e-2)
        assert jnp.allclose(attn_seq[si], at, atol=1e-2, rtol=1e-2)
    assert jnp.allclose(h_last, h_ref, atol=1e-2, rtol=1e-2)

    # --- bf16 weight storage (halves weight DMA bytes); elementwise math f32 ---
    params_bf16 = pack_params(torch_params, H, V, weight_dtype=jnp.bfloat16)
    out_b, h_b, attn_b = decoder_attention_2d(input_ids, hidden, encoder_outputs,
                                              params_bf16, training=True)
    jax.block_until_ready((out_b, h_b, attn_b))
    assert jnp.allclose(out_b, ref_out, atol=6e-2, rtol=6e-2)
    assert jnp.allclose(h_b, ref_h, atol=6e-2, rtol=6e-2)
    assert jnp.allclose(attn_b, ref_attn, atol=6e-2, rtol=6e-2)

    print("KERNEL_OK")
</pallas_src>

<mosaic_0001>
module attributes {stable_mosaic.version = 11 : i64} {
  func.func @_encoder_proj_kernel(%arg0: i32, %arg1: memref<32x32xf32, #tpu.memory_space<vmem>>, %arg2: memref<32x32xf32, #tpu.memory_space<vmem>>, %arg3: memref<32x1xf32, #tpu.memory_space<vmem>>, %arg4: memref<32x32xf32, #tpu.memory_space<vmem>>) attributes {dimension_semantics = [#tpu.dimension_semantics<parallel>], iteration_bounds = array<i64: 1>, scalar_prefetch = 0 : i64, scratch_operands = 0 : i64, tpu.core_type = #tpu.core_type<tc>, window_params = [{transform_indices = @transform_0, window_bounds = array<i64: 32, 32>}, {pipeline_mode = #tpu.pipeline_mode<synchronous>, transform_indices = @transform_1, window_bounds = array<i64: 32, 32>}, {pipeline_mode = #tpu.pipeline_mode<synchronous>, transform_indices = @transform_2, window_bounds = array<i64: 32, 1>}, {transform_indices = @transform_3, window_bounds = array<i64: 32, 32>}]} {
    %c0 = arith.constant 0 : index
    %c0_0 = arith.constant 0 : index
    %0 = vector.load %arg2[%c0, %c0_0] : memref<32x32xf32, #tpu.memory_space<vmem>>, vector<32x32xf32>
    %c0_1 = arith.constant 0 : index
    %c0_2 = arith.constant 0 : index
    %1 = vector.load %arg1[%c0_1, %c0_2] : memref<32x32xf32, #tpu.memory_space<vmem>>, vector<32x32xf32>
    %cst = arith.constant dense<0.000000e+00> : vector<32x32xf32>
    %2 = tpu.matmul %0, %1, %cst {dimension_numbers = #tpu.dot_dimension_numbers<[1], [1], [0], [0], [0, 0, 1, 0], [], []>} : vector<32x32xf32>, vector<32x32xf32>, vector<32x32xf32> -> vector<32x32xf32>
    %c0_3 = arith.constant 0 : index
    %c0_4 = arith.constant 0 : index
    %3 = vector.load %arg3[%c0_3, %c0_4] : memref<32x1xf32, #tpu.memory_space<vmem>>, vector<32x1xf32>
    %4 = vector.broadcast %3 : vector<32x1xf32> to vector<32x32xf32>
    %5 = arith.addf %2, %4 : vector<32x32xf32>
    %c0_5 = arith.constant 0 : index
    %c0_6 = arith.constant 0 : index
    %6 = vector.load %arg4[%c0_5, %c0_6] : memref<32x32xf32, #tpu.memory_space<vmem>>, vector<32x32xf32>
    tpu.vector_store %arg4[%c0_5, %c0_6], %5 {strides = array<i32>} : memref<32x32xf32, #tpu.memory_space<vmem>>, vector<32x32xf32>,
    return
  }
  func.func @transform_0(%arg0: i32) -> (i32, i32) {
    %c0_i32 = arith.constant 0 : i32
    %c0_i32_0 = arith.constant 0 : i32
    return %arg0, %c0_i32 : i32, i32
  }
  func.func @transform_1(%arg0: i32) -> (i32, i32) {
    %c0_i32 = arith.constant 0 : i32
    %c0_i32_0 = arith.constant 0 : i32
    %c0_i32_1 = arith.constant 0 : i32
    return %c0_i32, %c0_i32_0 : i32, i32
  }
  func.func @transform_2(%arg0: i32) -> (i32, i32) {
    %c0_i32 = arith.constant 0 : i32
    %c0_i32_0 = arith.constant 0 : i32
    %c0_i32_1 = arith.constant 0 : i32
    return %c0_i32, %c0_i32_0 : i32, i32
  }
  func.func @transform_3(%arg0: i32) -> (i32, i32) {
    %c0_i32 = arith.constant 0 : i32
    %c0_i32_0 = arith.constant 0 : i32
    return %c0_i32, %arg0 : i32, i32
  }
}

</mosaic_0001>

<bundles_post_ra>
// kernel: tpu_custom_call.1
= control target key start
LH: loop header
LB: loop body
LE: loop exit
PB: predicated region body
PF: predicated region fallthrough
CT: control target
= control target key end

     0   :  { %8 = vsyncpa [#allocation3], 0  ;;  %s304_s0 = inlined_call_operand.vmem [shape: f32[32,32], index: 0, kind: input, shape index: {}]   ;;  %s305_s1 = inlined_call_operand.hbm [shape: f32[32,32], index: 1, kind: input, shape index: {}]   ;;  %s306_s2 = inlined_call_operand.vmem [shape: f32[32,1], index: 2, kind: input, shape index: {}]   ;;  %s307_s3 = inlined_call_operand.hbm [shape: f32[32,32], index: 3, kind: output, shape index: {}]  }
   0x1   :  { %9 = vsyncpa [#allocation4], 0  ;;  %s16_s14 = sshll.u32 %s305_s1, 4  ;;  %s219_s15 = smov [#allocation2]   ;;  %s17_s14 = int_to_ptr.hbm [resolvable:$true] %s16_s14 }
   0x2   :  { %s18_s16 = sshll.u32 %s219_s15, 4  ;;  %s220_s17 = smov 128   ;;  %s19_s16 = int_to_ptr.vmem [resolvable:$true] %s18_s16 }
   0x3   :  { %s221_s18 = smov 8  }
   0x4   :  { %24 = dma.hbm_to_vmem [thread:$0]  %s17_s14, 512, %s19_s16, [#allocation3], %s220_s17, %s220_s17, %s221_s18  }
   0x5   :  { %215 = dma.done.wait [#allocation3], 512  }
   0x6   :  { %216 = vsyncadd [#allocation3], 4294966784  ;;  %v222_v0 = vmov 0   ;;  %vm63_vm0 = vcmask 261120   ;;  %v38_v1 = vld [vmem:[%s304_s0 + $0x18] sm:$0xff]  ;;  %v37_v2 = vld [vmem:[%s304_s0 + $0x10] sm:$0xff] }
   0x7   :  { %166 = vset.pattern.permute.xlu1 %v222_v0  ;;  %165 = vset.pattern.permute.xlu0 %v222_v0  ;;  %v41_v3 = vld [vmem:[%s306_s2 + $0x10] sm:$0xff]  ;;  %v39_v4 = vld [vmem:[%s306_s2] sm:$0xff]  ;;  %v36_v5 = vld [vmem:[%s304_s0 + $0x8] sm:$0xff]  ;;  %s127_s9 = sshll.u32 %s307_s3, 4  ;;  %s128_s9 = int_to_ptr.hbm [resolvable:$true] %s127_s9 }
   0x8   :  { %140 = vmatpush.xpose.msk.msra.mxu0 %vm63_vm0, %v38_v1  ;;  %148 = vmatpush.xpose.msk.msra.mxu1 %vm63_vm0, %v38_v1  ;;  %v42_v6 = vld [vmem:[%s306_s2 + $0x18] sm:$0xff]  ;;  %v40_v7 = vld [vmem:[%s306_s2 + $0x8] sm:$0xff]  ;;  %v35_v8 = vld [vmem:[%s304_s0] sm:$0xff]  ;;  %s223_s0 = smov [#allocation5]  }
   0x9   :  { %149 = vmatpush.xpose.msk.msra.mxu2 %vm63_vm0, %v38_v1  ;;  %150 = vmatpush.xpose.msk.msra.mxu3 %vm63_vm0, %v38_v1  ;;  %v31_v9 = vld [vmem:[#allocation2] sm:$0xff]  ;;  %v32_v10 = vld [vmem:[#allocation2 + $0x8] sm:$0xff]  ;;  %v33_v11 = vld [vmem:[#allocation2 + $0x10] sm:$0xff]  ;;  %s125_s2 = sshll.u32 %s223_s0, 4  ;;  %s126_s2 = int_to_ptr.vmem [resolvable:$true] %s125_s2 }
   0xa   :  { %55 = vperm.xlu1 %166, %v41_v3   ;;  %45 = vperm.xlu0 %165, %v39_v4   ;;  %v34_v12 = vld [vmem:[#allocation2 + $0x18] sm:$0xff] }
   0xc   :  { %141 = vmatpush.xpose.msk.msra.mxu0 %vm63_vm0, %v37_v2  ;;  %151 = vmatpush.xpose.msk.msra.mxu1 %vm63_vm0, %v37_v2 }
   0xd   :  { %152 = vmatpush.xpose.msk.msra.mxu2 %vm63_vm0, %v37_v2  ;;  %153 = vmatpush.xpose.msk.msra.mxu3 %vm63_vm0, %v37_v2 }
  0x10   :  { %142 = vmatpush.xpose.msk.msra.mxu0 %vm63_vm0, %v36_v5  ;;  %154 = vmatpush.xpose.msk.msra.mxu1 %vm63_vm0, %v36_v5 }
  0x11   :  { %155 = vmatpush.xpose.msk.msra.mxu2 %vm63_vm0, %v36_v5  ;;  %156 = vmatpush.xpose.msk.msra.mxu3 %vm63_vm0, %v36_v5 }
  0x12   :  { %60 = vperm.xlu1 %166, %v42_v6   ;;  %50 = vperm.xlu0 %165, %v40_v7  }
  0x14   :  { %143 = vmatpush.xpose.msk.msra.mxu0 %vm63_vm0, %v35_v8  ;;  %157 = vmatpush.xpose.msk.msra.mxu1 %vm63_vm0, %v35_v8 }
  0x15   :  { %158 = vmatpush.xpose.msk.msra.mxu2 %vm63_vm0, %v35_v8  ;;  %159 = vmatpush.xpose.msk.msra.mxu3 %vm63_vm0, %v35_v8 }
  0x17   :  { %144 = vmatmul.msk.f32.vlgmr.msra.gmra.mxu0 %vm63_vm0, %v31_v9  ;;  %145 = vmatmul.msk.f32.vlgmr.msra.gmra.mxu1 %vm63_vm0, %v32_v10 }
  0x18   :  { %146 = vmatmul.msk.f32.vlgmr.msra.gmra.mxu2 %vm63_vm0, %v33_v11  ;;  %147 = vmatmul.msk.f32.vlgmr.msra.gmra.mxu3 %vm63_vm0, %v34_v12 }
  0x7c   :  { %v46_v13 = vpop.permute.xlu0 %45  ;;  %v56_v14 = vpop.permute.xlu1 %55 }
  0x84   :  { %v51_v15 = vpop.permute.xlu0 %50  ;;  %v61_v20 = vpop.permute.xlu1 %60 }
  0x94   :  { %v105_v16 = vpop.f32.mrf.mxu0  ;;  %v108_v17 = vpop.f32.mrf.mxu1 }
  0x95   :  { %v106_v18 = vadd.f32 %v105_v16, %v46_v13  ;;  %v109_v19 = vadd.f32 %v108_v17, %v51_v15 }
  0x97   :  { %117 = vst.msk [vmem:[#allocation5] sm:$0xff] %vm63_vm0, %v106_v18 }
  0x98   :  { %118 = vst.msk [vmem:[#allocation5 + $0x8] sm:$0xff] %vm63_vm0, %v109_v19 }
  0x9b   :  { %v111_v21 = vpop.f32.mrf.mxu2  ;;  %v114_v22 = vpop.f32.mrf.mxu3 }
  0x9c   :  { %v112_v23 = vadd.f32 %v111_v21, %v56_v14  ;;  %v115_v24 = vadd.f32 %v114_v22, %v61_v20 }
  0x9e   :  { %119 = vst.msk [vmem:[#allocation5 + $0x10] sm:$0xff] %vm63_vm0, %v112_v23 }
  0x9f   :  { %120 = vst.msk [vmem:[#allocation5 + $0x18] sm:$0xff] %vm63_vm0, %v115_v24 }
  0xa0   :  { %133 = dma.vmem_to_hbm [thread:$0]  %s126_s2, 512, %s128_s9, [#allocation4], %s220_s17, %s220_s17, %s221_s18  }
  0xa1   :  { %217 = dma.done.wait [#allocation4], 512  }
  0xa2   :  { %218 = vsyncadd [#allocation4], 4294966784 }
  0xa3   :  { %138 = vsyncpa [#allocation3], 1 }
  0xa4   :  { %139 = vsyncpa [#allocation4], 1 }

</bundles_post_ra>
